<compile_context>
chip_gen: v6e
topology: v6e:2x2x1
jax: 0.10.0
libtpu: 0.0.40
codegen_flags: <defaults>
</compile_context>

<pallas_src>
import math

import jax
import jax.numpy as jnp
from jax.experimental import pallas as pl
from jax.experimental.pallas import tpu as pltpu


def _round_up(x: int, m: int) -> int:
    return ((x + m - 1) // m) * m


def make_mlp_kernel(n_cat, cat_dims, d_num, out_dim, k_pad, x_dtype):
    """Kernel ref order (transposed, lane-dense layout):
         num_t [d_num, tb], (cat_t [n_cat, tb]), w_all_t [out_dim, k_pad],
         b_t [out_dim, 1], out_t [out_dim, tb]
    """
    k_used = d_num + sum(cat_dims)
    pad = k_pad - k_used
    rows = list(cat_dims)
    if n_cat and pad:
        # Fold the K padding into the last one-hot block: valid indices are
        # < cat_dims[-1], so the extra rows compare False and stay zero (and
        # the matching W_all rows are zero-padded in the wrapper anyway).
        rows[-1] += pad
    max_rows = max(rows) if n_cat else 0

    def body(num_t_ref, cat_t_ref, w_t_ref, b_t_ref, out_t_ref):
        tb = out_t_ref.shape[1]
        pieces = [num_t_ref[...]]
        if n_cat:
            # One hoisted iota (JAX does not CSE broadcast_in_dim); each
            # category takes a static prefix slice of it.
            iota = jax.lax.broadcasted_iota(jnp.int32, (max_rows, 1), 0)
            for i in range(n_cat):
                idx = cat_t_ref[i:i + 1, :]                      # [1, tb] int32
                pieces.append((iota[:rows[i]] == idx).astype(x_dtype))
        elif pad:
            pieces.append(jnp.zeros((pad, tb), x_dtype))
        x_t = pieces[0] if len(pieces) == 1 else jnp.concatenate(pieces, axis=0)
        # Single MXU matmul per batch tile: [out_dim, K] @ [K, tb] -> [out_dim, tb]
        acc = jnp.dot(w_t_ref[...], x_t, preferred_element_type=jnp.float32)
        acc = acc + b_t_ref[...]                                 # lane-broadcast bias
        out_t_ref[...] = acc.astype(out_t_ref.dtype)

    if n_cat:
        def kernel(num_t_ref, cat_t_ref, w_t_ref, b_t_ref, out_t_ref):
            body(num_t_ref, cat_t_ref, w_t_ref, b_t_ref, out_t_ref)
    else:
        def kernel(num_t_ref, w_t_ref, b_t_ref, out_t_ref):
            body(num_t_ref, None, w_t_ref, b_t_ref, out_t_ref)
    return kernel


def basic_mlp_forward(num_features, cat_features, emb_tables, fc_weights,
                      fc_biases, *, batch_tile: int = 8192,
                      stream_dtype=jnp.float32):
    """Folds the Linear chain, fuses tables with W_eff, runs one lane-dense
    matmul per batch tile."""
    n_cat = len(emb_tables)
    cat_dims = tuple(int(t.shape[0]) for t in emb_tables)
    d_num = int(num_features.shape[1])
    out_dim = int(fc_weights[-1].shape[1])
    B = int(num_features.shape[0])

    f32 = jnp.float32
    s_item = jnp.dtype(stream_dtype).itemsize

    # ---- Algebraic pre-folding (one-time, tiny XLA matmuls) ----
    w_eff = fc_weights[0].astype(f32)
    b_eff = jnp.reshape(fc_biases[0].astype(f32), (1, -1))
    for w, b in zip(fc_weights[1:], fc_biases[1:]):
        w = w.astype(f32)
        w_eff = w_eff @ w
        b_eff = b_eff @ w + jnp.reshape(b.astype(f32), (1, -1))

    # ---- Fuse embedding tables with their W_eff row blocks; one [K,out] weight ----
    parts = [w_eff[:d_num]]
    off = d_num
    for t in emb_tables:
        d = int(t.shape[1])
        parts.append(t.astype(f32) @ w_eff[off:off + d])
        off += d
    w_all = parts[0] if len(parts) == 1 else jnp.concatenate(parts, axis=0)
    k_used = d_num + sum(cat_dims)
    k_pad = _round_up(max(k_used, 8), 8)
    if k_pad != k_used:
        w_all = jnp.pad(w_all, ((0, k_pad - k_used), (0, 0)))

    # ---- Lane-dense (transposed) layout: batch -> 128-lane axis ----
    num_t = num_features.astype(stream_dtype).T          # [d_num, B]
    w_all_t = w_all.T.astype(stream_dtype)                # [out_dim, k_pad]
    b_t = b_eff.T                                         # [out_dim, 1] f32
    cat_t = None
    if n_cat:
        cat_t = cat_features.astype(jnp.int32).T          # [n_cat, B]

    # ---- Batch tiling: big lane-aligned tiles, >=2 steps when possible (v7x) ----
    tb_cap = max(128, (int(batch_tile) // 128) * 128)
    half = _round_up(-(-B // 2), 128)                     # ceil(B/2) lane-aligned
    tb = min(tb_cap, half)
    if tb >= B:
        tb = B                                            # tiny batch: single full block

    def vmem_estimate(t):
        acts = 2 * t * (d_num * s_item + n_cat * 4 + out_dim * 4)   # double-buffered blocks
        resident = 2 * (k_pad * out_dim * s_item + out_dim * 4)      # weights + bias
        scratch = t * k_pad * (s_item + 4) + 2 * t * out_dim * 4     # x^T, temps, acc
        return acts + resident + scratch

    budget = 40 * 1024 * 1024            # safe under v7x's 64 MiB (v5e/v6e: 128 MiB)
    est = vmem_estimate(tb)
    while tb > 512 and tb % 128 == 0 and est > budget:
        tb = max(512, ((tb // 2) // 128) * 128)
        est = vmem_estimate(tb)
    grid_b = pl.cdiv(B, tb)
    vmem_limit = int(min(56 * 1024 * 1024, max(16 * 1024 * 1024, 2 * est)))

    kernel = make_mlp_kernel(n_cat, cat_dims, d_num, out_dim, k_pad, stream_dtype)

    blk = lambda i: (0, i)       # activation blocks advance along the batch (lane) axis
    const = lambda i: (0, 0)     # parameters stay VMEM-resident across grid steps

    in_specs = [pl.BlockSpec((d_num, tb), blk)]
    args = [num_t]
    if n_cat:
        in_specs.append(pl.BlockSpec((n_cat, tb), blk))
        args.append(cat_t)
    in_specs += [pl.BlockSpec((out_dim, k_pad), const),
                 pl.BlockSpec((out_dim, 1), const)]
    args += [w_all_t, b_t]
    out_spec = pl.BlockSpec((out_dim, tb), blk)

    cost = pl.CostEstimate(
        flops=2 * B * k_pad * out_dim,
        transcendentals=0,
        bytes_accessed=int(B * (d_num * s_item + n_cat * 4 + out_dim * 4)
                           + k_pad * out_dim * s_item + out_dim * 4),
    )

    out_t = pl.pallas_call(
        kernel,
        out_shape=jax.ShapeDtypeStruct((out_dim, B), jnp.float32),
        grid=(grid_b,),
        in_specs=in_specs,
        out_specs=out_spec,
        compiler_params=pltpu.CompilerParams(
            dimension_semantics=("parallel",),
            vmem_limit_bytes=vmem_limit,
        ),
        cost_estimate=cost,
    )(*args)

    return out_t.T                                        # [B, out_dim]


def reference_forward(num_features, cat_features, emb_tables, fc_weights, fc_biases):
    """Pure-JAX reference mirroring BasicMLPModule.forward (eval mode)."""
    embs = [emb_tables[i][cat_features[:, i]] for i in range(len(emb_tables))]
    x = jnp.concatenate([num_features] + embs, axis=1)
    for w, b in zip(fc_weights, fc_biases):   # dropout == identity in eval mode
        x = x @ jnp.asarray(w) + jnp.reshape(jnp.asarray(b), (1, -1))
    return x


def fc_layer_dims(input_dim: int, num_layers: int, output_dim: int):
    """Replicates BasicMLPModule._construct_fc layer-size logic."""
    dims = []
    dim = input_dim
    for _ in range(num_layers - 1):
        out_dim = dim // 2
        if out_dim <= output_dim:
            break
        dims.append((dim, out_dim))
        dim = out_dim
    dims.append((dim, output_dim))
    return dims


def _make_inputs(key, batch, num_feat_dim, cat_dims):
    k_num, k_cat = jax.random.split(key)
    num_features = jax.random.normal(k_num, (batch, num_feat_dim), jnp.float32)
    cat_features = jnp.stack(
        [jax.random.randint(jax.random.fold_in(k_cat, i), (batch,), 0, cat_dims[i])
         for i in range(len(cat_dims))],
        axis=1,
    ).astype(jnp.int32)
    return num_features, cat_features


if __name__ == "__main__":
    # Module config (small, consistent with the torch module).
    feature_dim = 16
    cat_dims = [7, 13]
    dropout_rate = 0.1  # identity at inference
    num_layers = 3
    output_dim = 1
    batch = 8

    n_cat = len(cat_dims)
    # _get_cat_emb_dims with cat_emb_dims=None
    cat_emb_dims = [max(2, int(math.log2(d))) for d in cat_dims]
    # _get_encoded_dim: feature_dim counts raw categorical columns, so numeric
    # feature width is feature_dim - n_cat.
    encoded_dim = feature_dim + sum(cat_emb_dims) - n_cat
    num_feat_dim = feature_dim - n_cat

    layer_dims = fc_layer_dims(encoded_dim, num_layers, output_dim)

    # Deterministic parameter init.
    key = jax.random.PRNGKey(0)
    keys = jax.random.split(key, 2 + n_cat + 2 * len(layer_dims))
    k_in_small, k_in_big = keys[0], keys[1]
    emb_keys = keys[2: 2 + n_cat]
    fc_keys = keys[2 + n_cat:]

    emb_tables = [
        jax.random.normal(emb_keys[i], (cat_dims[i], cat_emb_dims[i]), jnp.float32)
        for i in range(n_cat)
    ]
    fc_weights, fc_biases = [], []
    for l, (din, dout) in enumerate(layer_dims):
        scale = 1.0 / math.sqrt(din)
        fc_weights.append(scale * jax.random.normal(fc_keys[2 * l], (din, dout), jnp.float32))
        fc_biases.append(scale * jax.random.normal(fc_keys[2 * l + 1], (1, dout), jnp.float32))

    # ---- Small-batch run (single grid step), f32 streaming, tight check ----
    num_features, cat_features = _make_inputs(k_in_small, batch, num_feat_dim, cat_dims)
    out = basic_mlp_forward(num_features, cat_features, emb_tables, fc_weights, fc_biases)
    out = jax.block_until_ready(out)
    ref = reference_forward(num_features, cat_features, emb_tables, fc_weights, fc_biases)
    assert out.shape == (batch, output_dim), out.shape
    # The wrapper folds the Linear chain, so float rounding order differs.
    assert jnp.allclose(out, ref, atol=1e-4, rtol=1e-4), (out, ref)

    # ---- Multi-tile run with a ragged last block (no pad copy), f32 ----
    batch2 = 300
    num2, cat2 = _make_inputs(k_in_big, batch2, num_feat_dim, cat_dims)
    out2 = basic_mlp_forward(num2, cat2, emb_tables, fc_weights, fc_biases,
                             batch_tile=128)
    out2 = jax.block_until_ready(out2)
    ref2 = reference_forward(num2, cat2, emb_tables, fc_weights, fc_biases)
    assert out2.shape == (batch2, output_dim), out2.shape
    assert jnp.allclose(out2, ref2, atol=1e-4, rtol=1e-4), (out2, ref2)

    # ---- bf16 streaming path (f32 accumulation), loose check ----
    out_bf16 = basic_mlp_forward(num2, cat2, emb_tables, fc_weights, fc_biases,
                                 batch_tile=128, stream_dtype=jnp.bfloat16)
    out_bf16 = jax.block_until_ready(out_bf16)
    assert out_bf16.shape == (batch2, output_dim), out_bf16.shape
    assert jnp.allclose(out_bf16, ref2, atol=1e-1, rtol=1e-1), (out_bf16, ref2)

    print("KERNEL_OK")
</pallas_src>

<mosaic_0001>
module attributes {stable_mosaic.version = 11 : i64} {
  func.func @kernel(%arg0: i32, %arg1: memref<14x8xf32, #tpu.memory_space<vmem>>, %arg2: memref<2x8xi32, #tpu.memory_space<vmem>>, %arg3: memref<1x40xf32, #tpu.memory_space<vmem>>, %arg4: memref<1x1xf32, #tpu.memory_space<vmem>>, %arg5: memref<1x8xf32, #tpu.memory_space<vmem>>) attributes {dimension_semantics = [#tpu.dimension_semantics<parallel>], iteration_bounds = array<i64: 1>, scalar_prefetch = 0 : i64, scratch_operands = 0 : i64, tpu.core_type = #tpu.core_type<tc>, window_params = [{transform_indices = @transform_0, window_bounds = array<i64: 14, 8>}, {transform_indices = @transform_1, window_bounds = array<i64: 2, 8>}, {pipeline_mode = #tpu.pipeline_mode<synchronous>, transform_indices = @transform_2, window_bounds = array<i64: 1, 40>}, {pipeline_mode = #tpu.pipeline_mode<synchronous>, transform_indices = @transform_3, window_bounds = array<i64: 1, 1>}, {transform_indices = @transform_4, window_bounds = array<i64: 1, 8>}]} {
    %c0 = arith.constant 0 : index
    %c0_0 = arith.constant 0 : index
    %0 = vector.load %arg1[%c0, %c0_0] : memref<14x8xf32, #tpu.memory_space<vmem>>, vector<14x8xf32>
    %1 = tpu.iota {dimensions = array<i32: 0>} : vector<19x1xi32>
    %c0_1 = arith.constant 0 : index
    %c0_2 = arith.constant 0 : index
    %2 = vector.load %arg2[%c0_1, %c0_2] : memref<2x8xi32, #tpu.memory_space<vmem>>, vector<1x8xi32>
    %3 = vector.extract_strided_slice %1 {offsets = [0, 0], sizes = [7, 1], strides = [1, 1]} : vector<19x1xi32> to vector<7x1xi32>
    %4 = vector.broadcast %3 : vector<7x1xi32> to vector<7x8xi32>
    %5 = vector.broadcast %2 : vector<1x8xi32> to vector<7x8xi32>
    %6 = arith.cmpi eq, %4, %5 : vector<7x8xi32>
    %7 = arith.extui %6 : vector<7x8xi1> to vector<7x8xi32>
    %8 = arith.sitofp %7 : vector<7x8xi32> to vector<7x8xf32>
    %c1 = arith.constant 1 : index
    %c0_3 = arith.constant 0 : index
    %9 = vector.load %arg2[%c1, %c0_3] : memref<2x8xi32, #tpu.memory_space<vmem>>, vector<1x8xi32>
    %10 = vector.broadcast %1 : vector<19x1xi32> to vector<19x8xi32>
    %11 = vector.broadcast %9 : vector<1x8xi32> to vector<19x8xi32>
    %12 = arith.cmpi eq, %10, %11 : vector<19x8xi32>
    %13 = arith.extui %12 : vector<19x8xi1> to vector<19x8xi32>
    %14 = arith.sitofp %13 : vector<19x8xi32> to vector<19x8xf32>
    %15 = tpu.concatenate %0, %8, %14 in 0 : vector<14x8xf32>, vector<7x8xf32>, vector<19x8xf32> -> vector<40x8xf32>
    %c0_4 = arith.constant 0 : index
    %c0_5 = arith.constant 0 : index
    %16 = vector.load %arg3[%c0_4, %c0_5] : memref<1x40xf32, #tpu.memory_space<vmem>>, vector<1x40xf32>
    %cst = arith.constant dense<0.000000e+00> : vector<1x8xf32>
    %17 = tpu.matmul %16, %15, %cst {dimension_numbers = #tpu.dot_dimension_numbers<[1], [0], [0], [1], [0, 0, 1, 1], [], []>} : vector<1x40xf32>, vector<40x8xf32>, vector<1x8xf32> -> vector<1x8xf32>
    %c0_6 = arith.constant 0 : index
    %c0_7 = arith.constant 0 : index
    %18 = vector.load %arg4[%c0_6, %c0_7] : memref<1x1xf32, #tpu.memory_space<vmem>>, vector<1x1xf32>
    %19 = vector.broadcast %18 : vector<1x1xf32> to vector<1x8xf32>
    %20 = arith.addf %17, %19 : vector<1x8xf32>
    %c0_8 = arith.constant 0 : index
    %c0_9 = arith.constant 0 : index
    %21 = vector.load %arg5[%c0_8, %c0_9] : memref<1x8xf32, #tpu.memory_space<vmem>>, vector<1x8xf32>
    tpu.vector_store %arg5[%c0_8, %c0_9], %20 {strides = array<i32>} : memref<1x8xf32, #tpu.memory_space<vmem>>, vector<1x8xf32>,
    return
  }
  func.func @transform_0(%arg0: i32) -> (i32, i32) {
    %c0_i32 = arith.constant 0 : i32
    %c0_i32_0 = arith.constant 0 : i32
    return %c0_i32, %arg0 : i32, i32
  }
  func.func @transform_1(%arg0: i32) -> (i32, i32) {
    %c0_i32 = arith.constant 0 : i32
    %c0_i32_0 = arith.constant 0 : i32
    return %c0_i32, %arg0 : i32, i32
  }
  func.func @transform_2(%arg0: i32) -> (i32, i32) {
    %c0_i32 = arith.constant 0 : i32
    %c0_i32_0 = arith.constant 0 : i32
    %c0_i32_1 = arith.constant 0 : i32
    return %c0_i32, %c0_i32_0 : i32, i32
  }
  func.func @transform_3(%arg0: i32) -> (i32, i32) {
    %c0_i32 = arith.constant 0 : i32
    %c0_i32_0 = arith.constant 0 : i32
    %c0_i32_1 = arith.constant 0 : i32
    return %c0_i32, %c0_i32_0 : i32, i32
  }
  func.func @transform_4(%arg0: i32) -> (i32, i32) {
    %c0_i32 = arith.constant 0 : i32
    %c0_i32_0 = arith.constant 0 : i32
    return %c0_i32, %arg0 : i32, i32
  }
}

</mosaic_0001>

<bundles_post_ra>
// kernel: tpu_custom_call.1
= control target key start
LH: loop header
LB: loop body
LE: loop exit
PB: predicated region body
PF: predicated region fallthrough
CT: control target
= control target key end

     0   :  { %s270_s0 = inlined_call_operand.vmem [shape: f32[14,8], index: 0, kind: input, shape index: {}]   ;;  %s271_s1 = inlined_call_operand.vmem [shape: s32[2,8], index: 1, kind: input, shape index: {}]   ;;  %s272_s2 = inlined_call_operand.vmem [shape: f32[1,40], index: 2, kind: input, shape index: {}]   ;;  %s273_s3 = inlined_call_operand.<no memory space> [shape: f32[1,1], index: 3, kind: input, shape index: {}]   ;;  %s274_s4 = inlined_call_operand.hbm [shape: f32[1,8], index: 4, kind: output, shape index: {}]  }
   0x1   :  { %v9_v0 = vstv %s273_s3 }
   0x2   :  { %10 = vst [vmem:[#allocation2] sm:$0x1] %v9_v0 }
   0x3   :  { %v22_v1 = vlaneseq  ;;  %v220_v2 = vmov 0.0   ;;  %v167_v3 = vld [vmem:[%s271_s1] ss:$0 sm:$0xff]  ;;  %vm221_vm0 = vmmov 0   ;;  %v169_v6 = vld [vmem:[%s271_s1 + $0x1] ss:$0 sm:$0xff] }
   0x4   :  { %180 = vmatprep.subr.mxu0 %v220_v2  ;;  %190 = vmatprep.mubr.msk.f32.mxu0 %vm221_vm0, %v220_v2  ;;  %v222_v7 = vmov 0  }
   0x5   :  { %v23_v4 = vshrl.u32 %v22_v1, 7  ;;  %197 = vset.pattern.permute.xlu0 %v222_v7 }
   0x9   :  { %v67_v5 = vld [vmem:[#allocation2] sm:$0x1] }
   0xa   :  { %11 = vsyncpa [#allocation4], 0  ;;  %v24_v8 = vadd.s32 8, %v23_v4  ;;  %v25_v9 = vadd.s32 16, %v23_v4  ;;  %vm39_vm1 = vcmp.eq.s32.totalorder %v23_v4, %v169_v6  ;;  %vm31_vm2 = vcmp.eq.s32.totalorder %v23_v4, %v167_v3  ;;  %70 = vperm.xlu0 %197, %v67_v5   ;;  %v21_v20 = vld [vmem:[%s270_s0 + $0x8] sm:$0x3f] }
   0xb   :  { %v170_v10 = vsel %vm39_vm1, 1.0, %v220_v2  ;;  %v168_v11 = vsel %vm31_vm2, 1.0, %v220_v2  ;;  %vm54_vm5 = vcmask 1044480   ;;  %vm63_vm6 = vcmask 1045504   ;;  %v20_v23 = vld [vmem:[%s270_s0] sm:$0xff]  ;;  %s223_s25 = smov [#allocation3]  }
   0xc   :  { %vm40_vm3 = vcmp.eq.s32.totalorder %v24_v8, %v169_v6  ;;  %vm41_vm4 = vcmp.eq.s32.totalorder %v25_v9, %v169_v6  ;;  %v55_v12 = vrot.slane %v170_v10, 3  ;;  %v49_v17 = vrot.slane %v168_v11, 2  ;;  %v66_v24 = vld [vmem:[%s272_s2] sm:$0x1]  ;;  %s159_s26 = sshll.u32 %s223_s25, 4  ;;  %s160_s26 = int_to_ptr.vmem [resolvable:$true] %s159_s26 }
   0xd   :  { %v171_v13 = vsel %vm40_vm3, 1.0, %v220_v2  ;;  %v172_v14 = vsel %vm41_vm4, 1.0, %v220_v2  ;;  %vm77_vm7 = vcmask 326656   ;;  %v75_v25 = vsub.s32 0, %v23_v4  ;;  %s198_s0 = scalar_lea.vmem %s160_s26, 16  ;;  %s202_s27 = scalar_lea.vmem %s160_s26, 32 }
   0xe   :  { %v56_v15 = vrot.slane %v171_v13, 3  ;;  %v58_v16 = vrot.slane %v172_v14, 3  ;;  %v65_v21 = vsel %vm54_vm5, %v49_v17, %v55_v12  ;;  %v64_v22 = vsel %vm63_vm6, %v21_v20, %v49_v17  ;;  %p199_p0 = scmp.ne.s32.totalorder %s160_s26, %s198_s0  ;;  %p203_p1 = scmp.lt.s32.totalorder %s160_s26, %s160_s26 }
   0xf   :  { %vm151_vm8 = vcmask 57344   ;;  %p204_p2 = scmp.lt.s32.totalorder %s202_s27, %s198_s0 }
  0x10   :  { %v59_v18 = vsel %vm54_vm5, %v56_v15, %v58_v16  ;;  %v57_v19 = vsel %vm54_vm5, %v55_v12, %v56_v15 }
  0x11   :  { %181 = vmatpush3.msra.mxu0 %v59_v18  ;;  %p205_p3 = por %p204_p2, %p203_p1 }
  0x12   :  { %182 = vmatprep.subr.mxu0 %v220_v2 }
  0x13   :  { %183 = vmatpush3.msra.mxu0 %v57_v19  ;;  %p206_p4 = pnand %p205_p3, %p199_p0 }
  0x14   :  { %184 = vmatprep.subr.mxu0 %v220_v2 }
  0x15   :  { %185 = vmatpush3.msra.mxu0 %v65_v21 }
  0x16   :  { %186 = vmatprep.subr.mxu0 %v220_v2 }
  0x17   :  { %187 = vmatpush3.msra.mxu0 %v64_v22 }
  0x18   :  { %188 = vmatprep.subr.mxu0 %v220_v2 }
  0x19   :  { %189 = vmatpush3.msra.mxu0 %v20_v23 }
  0x1a   :  { %191 = vmatmul.mubr.msk.f32.vlgmr.msra.gmra.mxu0 %vm77_vm7, %v66_v24 }
  0x85   :  { %v71_v26 = vpop.permute.xlu0 %70 }
  0x86   :  { %v76_v27 = vrot.slane %v71_v26, %v75_v25 }
  0xda   :  { %v147_v28 = vpop.f32.mrf.mxu0 }
  0xdb   :  { %v148_v29 = vadd.f32 %v147_v28, %v76_v27 }
  0xdc   :  { %v192_v30 = vpop.f32.mrf.mxu0 }
  0xdd   :  { %152 = vst.msk [vmem:[#allocation3] sm:$0x1] %vm151_vm8, %v148_v29 }
  0xde   :  { %209 = shalt.err (!%p206_p4)
}
  0xdf   :  { %162 = dma.vmem_to_hbm [thread:$0]  %s160_s26, 16, %s274_s4, [#allocation4]  }
  0xe0   :  { %218 = dma.done.wait [#allocation4], 16  }
  0xe1   :  { %219 = vsyncadd [#allocation4], 4294967280 }
  0xe2   :  { %166 = vsyncpa [#allocation4], 1 }

</bundles_post_ra>
